<compile_context>
chip_gen: v7x
topology: tpu7x:2x2x1
jax: 0.10.0
libtpu: 0.0.40
codegen_flags: <defaults>
</compile_context>

<pallas_src>
import functools

import jax
import jax.numpy as jnp
from jax import lax
from jax.experimental import pallas as pl
from jax.experimental.pallas import tpu as pltpu


def _corr_kernel(h1_ref, h2_ref, out_ref, acc_ref, *,
                 n_rows, tile_rows, has_tail, first_tile_partial):
    # acc_ref (SMEM f32[8]): [S1, S2, S11, S22, S12, mean1_est, mean2_est, pad]
    i = pl.program_id(0)

    x1 = h1_ref[...].astype(jnp.float32)          # (TM, D)
    x2 = h2_ref[...].astype(jnp.float32)          # (TM, D)

    # Row-sums (== torch.sum(H, 1) for this tile's rows).
    r1 = jnp.sum(x1, axis=1, keepdims=True)       # (TM, 1)
    r2 = jnp.sum(x2, axis=1, keepdims=True)       # (TM, 1)

    if has_tail:
        rows = (lax.broadcasted_iota(jnp.int32, (tile_rows, 1), 0)
                + i * tile_rows)
        valid = rows < n_rows

    @pl.when(i == 0)
    def _():
        # Approximate means from the first tile -> shift for numerical
        # stability of the one-pass statistics (result is shift-invariant).
        if first_tile_partial:
            s1_0 = jnp.sum(jnp.where(valid, r1, jnp.float32(0.0)))
            s2_0 = jnp.sum(jnp.where(valid, r2, jnp.float32(0.0)))
        else:
            s1_0 = jnp.sum(r1)
            s2_0 = jnp.sum(r2)
        nv0 = jnp.float32(min(tile_rows, n_rows))
        acc_ref[5] = s1_0 / nv0
        acc_ref[6] = s2_0 / nv0
        for t in range(5):
            acc_ref[t] = jnp.float32(0.0)

    m1 = acc_ref[5]
    m2 = acc_ref[6]
    d1 = r1 - m1
    d2 = r2 - m2
    if has_tail:
        # Undefined rows of a ragged last block MUST be zeroed (Pallas does
        # not guarantee zero-fill of partial blocks).
        zero = jnp.float32(0.0)
        d1 = jnp.where(valid, d1, zero)
        d2 = jnp.where(valid, d2, zero)

    # Five reduce-to-scalars per step, accumulated into SMEM scalars.
    acc_ref[0] += jnp.sum(d1)
    acc_ref[1] += jnp.sum(d2)
    acc_ref[2] += jnp.sum(d1 * d1)
    acc_ref[3] += jnp.sum(d2 * d2)
    acc_ref[4] += jnp.sum(d1 * d2)

    @pl.when(i == pl.num_programs(0) - 1)
    def _():
        n = jnp.float32(n_rows)
        s1 = acc_ref[0]
        s2 = acc_ref[1]
        s11 = acc_ref[2]
        s22 = acc_ref[3]
        s12 = acc_ref[4]
        cov = s12 - s1 * s2 / n                                   # sum(h1_v*h2_v)
        v1 = jnp.maximum(s11 - s1 * s1 / n, jnp.float32(0.0))     # sum(h1_v**2)
        v2 = jnp.maximum(s22 - s2 * s2 / n, jnp.float32(0.0))     # sum(h2_v**2)
        out_ref[0] = cov / (jnp.sqrt(v1 * v2) + jnp.float32(0.001))


def _sublane_align(itemsize):
    if itemsize >= 4:
        return 8
    if itemsize == 2:
        return 16
    return 32


def _vmem_capacity_bytes():
    try:
        return int(pltpu.get_tpu_info().vmem_capacity_bytes)
    except Exception:
        return 128 << 20


def _choose_tile_rows(N, D, dtype, vmem_cap):
    """Size the row tile by in-VMEM (lane-padded) bytes per step."""
    itemsize = jnp.dtype(dtype).itemsize
    align = _sublane_align(itemsize)
    lane_d = ((D + 127) // 128) * 128                 # lane-padded width
    padded_row_bytes = lane_d * itemsize

    # Generation-aware input budget: leave headroom on 64-MiB-VMEM parts.
    if vmem_cap <= (64 << 20):
        input_budget = 24 << 20                       # v7x-class
    else:
        input_budget = 48 << 20                       # v5e / v6e

    # 2 inputs x 2 pipeline buffers x (tile_rows x padded_row_bytes) <= budget.
    tm = input_budget // (2 * 2 * padded_row_bytes)
    n_aligned = ((N + align - 1) // align) * align
    tm = min(tm, n_aligned)
    tm = max(align, (tm // align) * align)            # sublane-packing aligned
    return int(tm)


def corr_loss(H1, H2, *, tile_rows=None):
    assert H1.shape == H2.shape and H1.ndim == 2
    N, D = H1.shape
    dtype = H1.dtype
    itemsize = jnp.dtype(dtype).itemsize

    vmem_cap = _vmem_capacity_bytes()
    if tile_rows is None:
        tile_rows = _choose_tile_rows(N, D, dtype, vmem_cap)

    num_tiles = (N + tile_rows - 1) // tile_rows
    has_tail = (N % tile_rows) != 0
    first_tile_partial = tile_rows > N

    # VMEM accounting with the real padded footprint (+ margin); cap scoped
    # limit at 5/8 of physical VMEM (40 MiB on v7x, 80 MiB on v5e/v6e).
    lane_d = ((D + 127) // 128) * 128
    in_block_bytes = tile_rows * lane_d * itemsize
    needed_vmem = 2 * 2 * in_block_bytes + (2 << 20)
    vmem_limit = int(min(max(needed_vmem, 16 << 20), (vmem_cap * 5) // 8))

    kernel = functools.partial(
        _corr_kernel, n_rows=N, tile_rows=tile_rows,
        has_tail=has_tail, first_tile_partial=first_tile_partial)

    cost = pl.CostEstimate(
        flops=2 * N * D + 14 * N,
        transcendentals=1,
        bytes_accessed=2 * N * D * itemsize + 4,      # single pass, no padding
    )

    out = pl.pallas_call(
        kernel,
        out_shape=jax.ShapeDtypeStruct((1,), jnp.float32),
        grid_spec=pltpu.PrefetchScalarGridSpec(
            num_scalar_prefetch=0,
            grid=(num_tiles,),
            in_specs=[
                pl.BlockSpec((tile_rows, D), lambda i: (i, 0)),
                pl.BlockSpec((tile_rows, D), lambda i: (i, 0)),
            ],
            out_specs=pl.BlockSpec(memory_space=pltpu.SMEM),
            scratch_shapes=[
                pltpu.SMEM((8,), jnp.float32),        # S1,S2,S11,S22,S12,m1,m2
            ],
        ),
        compiler_params=pltpu.CompilerParams(
            dimension_semantics=("arbitrary",),       # reduction over row tiles
            vmem_limit_bytes=vmem_limit,
        ),
        cost_estimate=cost,
    )(H1, H2)
    return out[0]


def corr_loss_ref(H1, H2):
    h1 = jnp.sum(H1, axis=1)
    h2 = jnp.sum(H2, axis=1)
    h1_v = h1 - jnp.mean(h1)
    h2_v = h2 - jnp.mean(h2)
    return jnp.sum(h1_v * h2_v) / (
        jnp.sqrt(jnp.sum(h1_v ** 2) * jnp.sum(h2_v ** 2)) + 0.001)


if __name__ == "__main__":
    key = jax.random.PRNGKey(0)
    k1, k2 = jax.random.split(key)

    # Small shapes consistent with the module's forward (N samples, D features).
    N, D = 16, 32
    H1 = jax.random.normal(k1, (N, D), dtype=jnp.float32)
    H2 = jax.random.normal(k2, (N, D), dtype=jnp.float32)

    cost = jax.block_until_ready(corr_loss(H1, H2))
    ref = corr_loss_ref(H1, H2)
    assert jnp.allclose(cost, ref, rtol=1e-5, atol=1e-5), (cost, ref)

    # Exercise the multi-tile + ragged-tail (in-kernel masking) path.
    N2, D2 = 100, 32
    G1 = jax.random.normal(k1, (N2, D2), dtype=jnp.float32)
    G2 = jax.random.normal(k2, (N2, D2), dtype=jnp.float32)
    c2 = jax.block_until_ready(corr_loss(G1, G2, tile_rows=24))
    r2 = corr_loss_ref(G1, G2)
    assert jnp.allclose(c2, r2, rtol=1e-5, atol=1e-5), (c2, r2)

    print("KERNEL_OK")
</pallas_src>

<mosaic_0001>
module attributes {stable_mosaic.version = 11 : i64} {
  func.func @_corr_kernel(%arg0: i32, %arg1: memref<16x32xf32, #tpu.memory_space<vmem>>, %arg2: memref<16x32xf32, #tpu.memory_space<vmem>>, %arg3: memref<1xf32, #tpu.memory_space<smem>>, %arg4: memref<8xf32, #tpu.memory_space<smem>>) attributes {dimension_semantics = [#tpu.dimension_semantics<arbitrary>], iteration_bounds = array<i64: 1>, scalar_prefetch = 0 : i64, scratch_operands = 1 : i64, tpu.core_type = #tpu.core_type<tc>, window_params = [{transform_indices = @transform_0, window_bounds = array<i64: 16, 32>}, {transform_indices = @transform_1, window_bounds = array<i64: 16, 32>}, {transform_indices = @transform_2, window_bounds = array<i64: 1>}]} {
    %c0 = arith.constant 0 : index
    %c0_0 = arith.constant 0 : index
    %0 = vector.load %arg1[%c0, %c0_0] : memref<16x32xf32, #tpu.memory_space<vmem>>, vector<16x32xf32>
    %c0_1 = arith.constant 0 : index
    %c0_2 = arith.constant 0 : index
    %1 = vector.load %arg2[%c0_1, %c0_2] : memref<16x32xf32, #tpu.memory_space<vmem>>, vector<16x32xf32>
    %cst = arith.constant dense<0.000000e+00> : vector<16xf32>
    %2 = vector.multi_reduction <add>, %0, %cst [1] : vector<16x32xf32> to vector<16xf32>
    %3 = vector.shape_cast %2 : vector<16xf32> to vector<16x1xf32>
    %cst_3 = arith.constant dense<0.000000e+00> : vector<16xf32>
    %4 = vector.multi_reduction <add>, %1, %cst_3 [1] : vector<16x32xf32> to vector<16xf32>
    %5 = vector.shape_cast %4 : vector<16xf32> to vector<16x1xf32>
    %c0_i32 = arith.constant 0 : i32
    %6 = arith.cmpi eq, %arg0, %c0_i32 : i32
    %7 = arith.extui %6 : i1 to i32
    %c0_i32_4 = arith.constant 0 : i32
    %8 = arith.cmpi ne, %7, %c0_i32_4 : i32
    scf.if %8 {
      %56 = vector.shape_cast %3 : vector<16x1xf32> to vector<1x16x1xf32>
      %cst_18 = arith.constant dense<0.000000e+00> : vector<1xf32>
      %57 = vector.multi_reduction <add>, %56, %cst_18 [1, 2] : vector<1x16x1xf32> to vector<1xf32>
      %58 = vector.shape_cast %57 : vector<1xf32> to vector<1x1x1xf32>
      %59 = vector.extract %58[0, 0, 0] : f32 from vector<1x1x1xf32>
      %60 = vector.shape_cast %5 : vector<16x1xf32> to vector<1x16x1xf32>
      %cst_19 = arith.constant dense<0.000000e+00> : vector<1xf32>
      %61 = vector.multi_reduction <add>, %60, %cst_19 [1, 2] : vector<1x16x1xf32> to vector<1xf32>
      %62 = vector.shape_cast %61 : vector<1xf32> to vector<1x1x1xf32>
      %63 = vector.extract %62[0, 0, 0] : f32 from vector<1x1x1xf32>
      %cst_20 = arith.constant 1.600000e+01 : f32
      %64 = arith.divf %59, %cst_20 : f32
      %c5_21 = arith.constant 5 : index
      %65 = memref.load %arg4[%c5_21] : memref<8xf32, #tpu.memory_space<smem>>
      memref.store %64, %arg4[%c5_21] : memref<8xf32, #tpu.memory_space<smem>>
      %cst_22 = arith.constant 1.600000e+01 : f32
      %66 = arith.divf %63, %cst_22 : f32
      %c6_23 = arith.constant 6 : index
      %67 = memref.load %arg4[%c6_23] : memref<8xf32, #tpu.memory_space<smem>>
      memref.store %66, %arg4[%c6_23] : memref<8xf32, #tpu.memory_space<smem>>
      %cst_24 = arith.constant 0.000000e+00 : f32
      %c0_25 = arith.constant 0 : index
      %68 = memref.load %arg4[%c0_25] : memref<8xf32, #tpu.memory_space<smem>>
      memref.store %cst_24, %arg4[%c0_25] : memref<8xf32, #tpu.memory_space<smem>>
      %cst_26 = arith.constant 0.000000e+00 : f32
      %c1_27 = arith.constant 1 : index
      %69 = memref.load %arg4[%c1_27] : memref<8xf32, #tpu.memory_space<smem>>
      memref.store %cst_26, %arg4[%c1_27] : memref<8xf32, #tpu.memory_space<smem>>
      %cst_28 = arith.constant 0.000000e+00 : f32
      %c2_29 = arith.constant 2 : index
      %70 = memref.load %arg4[%c2_29] : memref<8xf32, #tpu.memory_space<smem>>
      memref.store %cst_28, %arg4[%c2_29] : memref<8xf32, #tpu.memory_space<smem>>
      %cst_30 = arith.constant 0.000000e+00 : f32
      %c3_31 = arith.constant 3 : index
      %71 = memref.load %arg4[%c3_31] : memref<8xf32, #tpu.memory_space<smem>>
      memref.store %cst_30, %arg4[%c3_31] : memref<8xf32, #tpu.memory_space<smem>>
      %cst_32 = arith.constant 0.000000e+00 : f32
      %c4_33 = arith.constant 4 : index
      %72 = memref.load %arg4[%c4_33] : memref<8xf32, #tpu.memory_space<smem>>
      memref.store %cst_32, %arg4[%c4_33] : memref<8xf32, #tpu.memory_space<smem>>
    } else {
    }
    %c5 = arith.constant 5 : index
    %9 = memref.load %arg4[%c5] : memref<8xf32, #tpu.memory_space<smem>>
    %c6 = arith.constant 6 : index
    %10 = memref.load %arg4[%c6] : memref<8xf32, #tpu.memory_space<smem>>
    %11 = vector.broadcast %9 : f32 to vector<16x1xf32>
    %12 = arith.subf %3, %11 : vector<16x1xf32>
    %13 = vector.broadcast %10 : f32 to vector<16x1xf32>
    %14 = arith.subf %5, %13 : vector<16x1xf32>
    %c0_5 = arith.constant 0 : index
    %15 = memref.load %arg4[%c0_5] : memref<8xf32, #tpu.memory_space<smem>>
    %16 = vector.shape_cast %12 : vector<16x1xf32> to vector<1x16x1xf32>
    %cst_6 = arith.constant dense<0.000000e+00> : vector<1xf32>
    %17 = vector.multi_reduction <add>, %16, %cst_6 [1, 2] : vector<1x16x1xf32> to vector<1xf32>
    %18 = vector.shape_cast %17 : vector<1xf32> to vector<1x1x1xf32>
    %19 = vector.extract %18[0, 0, 0] : f32 from vector<1x1x1xf32>
    %20 = arith.addf %15, %19 : f32
    %c0_7 = arith.constant 0 : index
    %21 = memref.load %arg4[%c0_7] : memref<8xf32, #tpu.memory_space<smem>>
    memref.store %20, %arg4[%c0_7] : memref<8xf32, #tpu.memory_space<smem>>
    %c1 = arith.constant 1 : index
    %22 = memref.load %arg4[%c1] : memref<8xf32, #tpu.memory_space<smem>>
    %23 = vector.shape_cast %14 : vector<16x1xf32> to vector<1x16x1xf32>
    %cst_8 = arith.constant dense<0.000000e+00> : vector<1xf32>
    %24 = vector.multi_reduction <add>, %23, %cst_8 [1, 2] : vector<1x16x1xf32> to vector<1xf32>
    %25 = vector.shape_cast %24 : vector<1xf32> to vector<1x1x1xf32>
    %26 = vector.extract %25[0, 0, 0] : f32 from vector<1x1x1xf32>
    %27 = arith.addf %22, %26 : f32
    %c1_9 = arith.constant 1 : index
    %28 = memref.load %arg4[%c1_9] : memref<8xf32, #tpu.memory_space<smem>>
    memref.store %27, %arg4[%c1_9] : memref<8xf32, #tpu.memory_space<smem>>
    %c2 = arith.constant 2 : index
    %29 = memref.load %arg4[%c2] : memref<8xf32, #tpu.memory_space<smem>>
    %30 = arith.mulf %12, %12 : vector<16x1xf32>
    %31 = vector.shape_cast %30 : vector<16x1xf32> to vector<1x16x1xf32>
    %cst_10 = arith.constant dense<0.000000e+00> : vector<1xf32>
    %32 = vector.multi_reduction <add>, %31, %cst_10 [1, 2] : vector<1x16x1xf32> to vector<1xf32>
    %33 = vector.shape_cast %32 : vector<1xf32> to vector<1x1x1xf32>
    %34 = vector.extract %33[0, 0, 0] : f32 from vector<1x1x1xf32>
    %35 = arith.addf %29, %34 : f32
    %c2_11 = arith.constant 2 : index
    %36 = memref.load %arg4[%c2_11] : memref<8xf32, #tpu.memory_space<smem>>
    memref.store %35, %arg4[%c2_11] : memref<8xf32, #tpu.memory_space<smem>>
    %c3 = arith.constant 3 : index
    %37 = memref.load %arg4[%c3] : memref<8xf32, #tpu.memory_space<smem>>
    %38 = arith.mulf %14, %14 : vector<16x1xf32>
    %39 = vector.shape_cast %38 : vector<16x1xf32> to vector<1x16x1xf32>
    %cst_12 = arith.constant dense<0.000000e+00> : vector<1xf32>
    %40 = vector.multi_reduction <add>, %39, %cst_12 [1, 2] : vector<1x16x1xf32> to vector<1xf32>
    %41 = vector.shape_cast %40 : vector<1xf32> to vector<1x1x1xf32>
    %42 = vector.extract %41[0, 0, 0] : f32 from vector<1x1x1xf32>
    %43 = arith.addf %37, %42 : f32
    %c3_13 = arith.constant 3 : index
    %44 = memref.load %arg4[%c3_13] : memref<8xf32, #tpu.memory_space<smem>>
    memref.store %43, %arg4[%c3_13] : memref<8xf32, #tpu.memory_space<smem>>
    %c4 = arith.constant 4 : index
    %45 = memref.load %arg4[%c4] : memref<8xf32, #tpu.memory_space<smem>>
    %46 = arith.mulf %12, %14 : vector<16x1xf32>
    %47 = vector.shape_cast %46 : vector<16x1xf32> to vector<1x16x1xf32>
    %cst_14 = arith.constant dense<0.000000e+00> : vector<1xf32>
    %48 = vector.multi_reduction <add>, %47, %cst_14 [1, 2] : vector<1x16x1xf32> to vector<1xf32>
    %49 = vector.shape_cast %48 : vector<1xf32> to vector<1x1x1xf32>
    %50 = vector.extract %49[0, 0, 0] : f32 from vector<1x1x1xf32>
    %51 = arith.addf %45, %50 : f32
    %c4_15 = arith.constant 4 : index
    %52 = memref.load %arg4[%c4_15] : memref<8xf32, #tpu.memory_space<smem>>
    memref.store %51, %arg4[%c4_15] : memref<8xf32, #tpu.memory_space<smem>>
    %c0_i32_16 = arith.constant 0 : i32
    %53 = arith.cmpi eq, %arg0, %c0_i32_16 : i32
    %54 = arith.extui %53 : i1 to i32
    %c0_i32_17 = arith.constant 0 : i32
    %55 = arith.cmpi ne, %54, %c0_i32_17 : i32
    scf.if %55 {
      %c0_18 = arith.constant 0 : index
      %56 = memref.load %arg4[%c0_18] : memref<8xf32, #tpu.memory_space<smem>>
      %c1_19 = arith.constant 1 : index
      %57 = memref.load %arg4[%c1_19] : memref<8xf32, #tpu.memory_space<smem>>
      %c2_20 = arith.constant 2 : index
      %58 = memref.load %arg4[%c2_20] : memref<8xf32, #tpu.memory_space<smem>>
      %c3_21 = arith.constant 3 : index
      %59 = memref.load %arg4[%c3_21] : memref<8xf32, #tpu.memory_space<smem>>
      %c4_22 = arith.constant 4 : index
      %60 = memref.load %arg4[%c4_22] : memref<8xf32, #tpu.memory_space<smem>>
      %61 = arith.mulf %56, %57 : f32
      %cst_23 = arith.constant 1.600000e+01 : f32
      %62 = arith.divf %61, %cst_23 : f32
      %63 = arith.subf %60, %62 : f32
      %64 = arith.mulf %56, %56 : f32
      %cst_24 = arith.constant 1.600000e+01 : f32
      %65 = arith.divf %64, %cst_24 : f32
      %66 = arith.subf %58, %65 : f32
      %cst_25 = arith.constant 0.000000e+00 : f32
      %67 = arith.maximumf %66, %cst_25 : f32
      %68 = arith.mulf %57, %57 : f32
      %cst_26 = arith.constant 1.600000e+01 : f32
      %69 = arith.divf %68, %cst_26 : f32
      %70 = arith.subf %59, %69 : f32
      %cst_27 = arith.constant 0.000000e+00 : f32
      %71 = arith.maximumf %70, %cst_27 : f32
      %72 = arith.mulf %67, %71 : f32
      %73 = math.sqrt %72 : f32
      %cst_28 = arith.constant 1.000000e-03 : f32
      %74 = arith.addf %73, %cst_28 : f32
      %75 = arith.divf %63, %74 : f32
      %c0_29 = arith.constant 0 : index
      %76 = memref.load %arg3[%c0_29] : memref<1xf32, #tpu.memory_space<smem>>
      memref.store %75, %arg3[%c0_29] : memref<1xf32, #tpu.memory_space<smem>>
    } else {
    }
    return
  }
  func.func @transform_0(%arg0: i32) -> (i32, i32) {
    %c0_i32 = arith.constant 0 : i32
    %c0_i32_0 = arith.constant 0 : i32
    return %arg0, %c0_i32 : i32, i32
  }
  func.func @transform_1(%arg0: i32) -> (i32, i32) {
    %c0_i32 = arith.constant 0 : i32
    %c0_i32_0 = arith.constant 0 : i32
    return %arg0, %c0_i32 : i32, i32
  }
  func.func @transform_2(%arg0: i32) -> i32 {
    %c0_i32 = arith.constant 0 : i32
    %c0_i32_0 = arith.constant 0 : i32
    return %c0_i32 : i32
  }
}

</mosaic_0001>

<bundles_post_ra>
// kernel: tpu_custom_call.1
= control target key start
LH: loop header
LB: loop body
LE: loop exit
PB: predicated region body
PF: predicated region fallthrough
CT: control target
= control target key end

     0   :  { %7 = vsyncpa [#allocation4], 0  ;;  %s437_s0 = inlined_call_operand.hbm [shape: f32[16,32], index: 0, kind: input, shape index: {}]   ;;  %s438_s1 = inlined_call_operand.hbm [shape: f32[16,32], index: 1, kind: input, shape index: {}]   ;;  %s439_s2 = inlined_call_operand.hbm [shape: f32[1], index: 2, kind: output, shape index: {}]  }
   0x1   :  { %8 = vsyncpa [#allocation7], 0 }
   0x2   :  { %9 = vsyncpa [#allocation5], 0  ;;  %s356_s9 = smov [#allocation3]   ;;  %s296_s13 = scalar_lea.hbm %s437_s0, 256 }
   0x3   :  { %s15_s10 = sshll.u32 %s356_s9, 4  ;;  %p297_p0 = scmp.ne.s32.totalorder %s437_s0, %s296_s13  ;;  %s16_s10 = int_to_ptr.vmem [resolvable:$true] %s15_s10 }
   0x4   :  { %p300_p1 = scmp.lt.u32.totalorder %s296_s13, %s437_s0 }
   0x6   :  { %p302_p2 = pnand %p300_p1, %p297_p0 }
   0x8   :  { %305 = shalt.err (!%p302_p2)
}
   0x9   :  { %s306_s18 = scalar_lea.vmem %s16_s10, 256  ;;  %p311_p4 = scmp.lt.s32.totalorder %s16_s10, %s16_s10 }
   0xa   :  { %p307_p3 = scmp.ne.s32.totalorder %s16_s10, %s306_s18  ;;  %p312_p5 = scmp.lt.s32.totalorder %s306_s18, %s306_s18 }
   0xc   :  { %p313_p6 = por %p312_p5, %p311_p4 }
   0xe   :  { %p314_p7 = pnand %p313_p6, %p307_p3 }
  0x10   :  { %317 = shalt.err (!%p314_p7)
}
  0x11   :  { %s357_s19 = smov 128   ;;  %s358_s20 = smov 8  }
  0x12   :  { %21 = dma.hbm_to_vmem [thread:$0]  %s437_s0, 256, %s16_s10, [#allocation4], %s357_s19, %s357_s19, %s358_s20  }
  0x13   :  { %s359_s23 = smov [#allocation6]   ;;  %s318_s27 = scalar_lea.hbm %s438_s1, 256 }
  0x14   :  { %s27_s24 = sshll.u32 %s359_s23, 4  ;;  %p319_p8 = scmp.ne.s32.totalorder %s438_s1, %s318_s27  ;;  %s28_s24 = int_to_ptr.vmem [resolvable:$true] %s27_s24 }
  0x15   :  { %p322_p9 = scmp.lt.u32.totalorder %s318_s27, %s438_s1 }
  0x17   :  { %p324_p10 = pnand %p322_p9, %p319_p8 }
  0x19   :  { %327 = shalt.err (!%p324_p10)
}
  0x1a   :  { %s328_s4 = scalar_lea.vmem %s28_s24, 256  ;;  %p333_p12 = scmp.lt.s32.totalorder %s28_s24, %s28_s24 }
  0x1b   :  { %p329_p11 = scmp.ne.s32.totalorder %s28_s24, %s328_s4  ;;  %p334_p13 = scmp.lt.s32.totalorder %s328_s4, %s328_s4 }
  0x1d   :  { %p335_p0 = por %p334_p13, %p333_p12 }
  0x1f   :  { %p336_p1 = pnand %p335_p0, %p329_p11 }
  0x21   :  { %339 = shalt.err (!%p336_p1)
}
  0x22   :  { %33 = dma.hbm_to_vmem [thread:$0]  %s438_s1, 256, %s28_s24, [#allocation7], %s357_s19, %s357_s19, %s358_s20  }
  0x23   :  { %350 = dma.done.wait [#allocation4], 256  }
  0x24   :  { %351 = vsyncadd [#allocation4], 4294967040 }
  0x25   :  { %352 = dma.done.wait [#allocation7], 256  }
  0x26   :  { %353 = vsyncadd [#allocation7], 4294967040  ;;  %vm44_vm0 = vcmask 261120   ;;  %v42_v0 = vld [vmem:[#allocation6] sm:$0xff]  ;;  %v40_v1 = vld [vmem:[#allocation3] sm:$0xff]  ;;  %vm61_vm1 = vcmask 7168  }
  0x27   :  { %v43_v2 = vld [vmem:[#allocation6 + $0x8] sm:$0xff]  ;;  %v51_v3 = vsel %vm44_vm0, %v42_v0, 0.0  ;;  %v45_v4 = vsel %vm44_vm0, %v40_v1, 0.0  ;;  %v41_v5 = vld [vmem:[#allocation3 + $0x8] sm:$0xff]  ;;  %s360_s19 = smov 0.0   ;;  %s340_s0 = scalar_lea.hbm %s439_s2, 16 }
  0x28   :  { %52 = vadd.xlane.f32.xlu1 %v51_v3  ;;  %46 = vadd.xlane.f32.xlu0 %v45_v4  ;;  %v54_v6 = vsel %vm44_vm0, %v43_v2, 0.0  ;;  %v48_v7 = vsel %vm44_vm0, %v41_v5, 0.0  ;;  %p341_p2 = scmp.ne.s32.totalorder %s439_s2, %s340_s0  ;;  %p344_p3 = scmp.lt.u32.totalorder %s340_s0, %s439_s2 }
  0x2a   :  { %p346_p4 = pnand %p344_p3, %p341_p2 }
  0x2c   :  { %55 = vadd.xlane.f32.xlu1 %v54_v6  ;;  %49 = vadd.xlane.f32.xlu0 %v48_v7 }
  0xb5   :  { %v53_v8 = vpop.xlane.xlu1 %52  ;;  %v47_v9 = vpop.xlane.xlu0 %46 }
  0xb6   :  { %v74_v12 = vsel %vm61_vm1, %v53_v8, 0.0  ;;  %v62_v13 = vsel %vm61_vm1, %v47_v9, 0.0 }
  0xb9   :  { %v56_v10 = vpop.xlane.xlu1 %55  ;;  %v50_v11 = vpop.xlane.xlu0 %49 }
  0xba   :  { %v75_v14 = vsel %vm61_vm1, %v56_v10, 0.0  ;;  %v63_v15 = vsel %vm61_vm1, %v50_v11, 0.0 }
  0xbb   :  { %v76_v16 = vadd.f32 %v75_v14, %v74_v12  ;;  %v64_v17 = vadd.f32 %v63_v15, %v62_v13 }
  0xbd   :  { %77 = vadd.xlane.f32.xlu1 %v76_v16  ;;  %65 = vadd.xlane.f32.xlu0 %v64_v17 }
 0x14a   :  { %v78_v18 = vpop.xlane.xlu1 %77  ;;  %v66_v19 = vpop.xlane.xlu0 %65 }
 0x14b   :  { %v79_v20 = vrot.slane %v78_v18, 4  ;;  %v67_v21 = vrot.slane %v66_v19, 4 }
 0x14d   :  { %v80_v22 = vadd.f32 %v79_v20, %v78_v18  ;;  %v68_v23 = vadd.f32 %v67_v21, %v66_v19 }
 0x14f   :  { %v81_v24 = vrot.slane %v80_v22, 2  ;;  %v69_v25 = vrot.slane %v68_v23, 2 }
 0x151   :  { %v70_v26 = vadd.f32 %v69_v25, %v68_v23  ;;  %v82_v27 = vadd.f32 %v81_v24, %v80_v22 }
 0x153   :  { %v71_v28 = vrot.slane %v70_v26, 1  ;;  %v83_v29 = vrot.slane %v82_v27, 1 }
 0x155   :  { %v72_v30 = vadd.f32 %v71_v28, %v70_v26  ;;  %v84_v31 = vadd.f32 %v83_v29, %v82_v27 }
 0x157   :  { %268 = vpush %v72_v30 }
 0x158   :  { %270 = vpush %v84_v31 }
 0x188   :  { %s269_s1 = spop %268 }
 0x189   :  { %s88_s6 = smul.f32 0.0625, %s269_s1  ;;  %s271_s7 = spop %270 }
 0x18a   :  { %s93_s8 = smul.f32 0.0625, %s271_s7 }
 0x18b   :  { %v108_v32 = vstv %s88_s6 }
 0x18c   :  { %v109_v33 = vsub.f32 %v47_v9, %v108_v32  ;;  %v110_v34 = vsub.f32 %v50_v11, %v108_v32  ;;  %v111_v35 = vstv %s93_s8 }
 0x18d   :  { %v112_v36 = vsub.f32 %v53_v8, %v111_v35  ;;  %v113_v37 = vsub.f32 %v56_v10, %v111_v35 }
 0x18e   :  { %v116_v38 = vsel %vm61_vm1, %v109_v33, 0.0  ;;  %v117_v39 = vsel %vm61_vm1, %v110_v34, 0.0  ;;  %v148_v40 = vmul.f32 %v109_v33, %v109_v33  ;;  %v149_v41 = vmul.f32 %v110_v34, %v110_v34 }
 0x18f   :  { %v118_v42 = vadd.f32 %v117_v39, %v116_v38  ;;  %v132_v43 = vsel %vm61_vm1, %v112_v36, 0.0  ;;  %v133_v44 = vsel %vm61_vm1, %v113_v37, 0.0  ;;  %v166_v45 = vmul.f32 %v112_v36, %v112_v36 }
 0x190   :  { %v134_v46 = vadd.f32 %v133_v44, %v132_v43  ;;  %v150_v47 = vsel %vm61_vm1, %v148_v40, 0.0  ;;  %v151_v48 = vsel %vm61_vm1, %v149_v41, 0.0  ;;  %v167_v49 = vmul.f32 %v113_v37, %v113_v37 }
 0x191   :  { %119 = vadd.xlane.f32.xlu0 %v118_v42  ;;  %v168_v50 = vsel %vm61_vm1, %v166_v45, 0.0  ;;  %v184_v51 = vmul.f32 %v112_v36, %v109_v33  ;;  %v185_v52 = vmul.f32 %v113_v37, %v110_v34  ;;  %v152_v54 = vadd.f32 %v151_v48, %v150_v47 }
 0x192   :  { %135 = vadd.xlane.f32.xlu1 %v134_v46  ;;  %v169_v53 = vsel %vm61_vm1, %v167_v49, 0.0 }
 0x193   :  { %v170_v55 = vadd.f32 %v169_v53, %v168_v50  ;;  %v186_v56 = vsel %vm61_vm1, %v184_v51, 0.0  ;;  %v187_v57 = vsel %vm61_vm1, %v185_v52, 0.0 }
 0x194   :  { %v188_v58 = vadd.f32 %v187_v57, %v186_v56 }
 0x195   :  { %153 = vadd.xlane.f32.xlu0 %v152_v54 }
 0x196   :  { %171 = vadd.xlane.f32.xlu1 %v170_v55 }
 0x199   :  { %189 = vadd.xlane.f32.xlu0 %v188_v58 }
 0x21e   :  { %v120_v59 = vpop.xlane.xlu0 %119 }
 0x21f   :  { %v121_v60 = vrot.slane %v120_v59, 4  ;;  %v136_v61 = vpop.xlane.xlu1 %135 }
 0x220   :  { %v137_v62 = vrot.slane %v136_v61, 4 }
 0x221   :  { %v122_v63 = vadd.f32 %v121_v60, %v120_v59 }
 0x222   :  { %v138_v0 = vadd.f32 %v137_v62, %v136_v61  ;;  %v154_v1 = vpop.xlane.xlu0 %153 }
 0x223   :  { %v123_v2 = vrot.slane %v122_v63, 2  ;;  %v155_v3 = vrot.slane %v154_v1, 4  ;;  %v172_v4 = vpop.xlane.xlu1 %171 }
 0x224   :  { %v139_v5 = vrot.slane %v138_v0, 2  ;;  %v173_v6 = vrot.slane %v172_v4, 4 }
 0x225   :  { %v156_v7 = vadd.f32 %v155_v3, %v154_v1  ;;  %v124_v8 = vadd.f32 %v123_v2, %v122_v63 }
 0x226   :  { %v174_v9 = vadd.f32 %v173_v6, %v172_v4  ;;  %v190_v10 = vpop.xlane.xlu0 %189  ;;  %v140_v11 = vadd.f32 %v139_v5, %v138_v0 }
 0x227   :  { %v157_v12 = vrot.slane %v156_v7, 2  ;;  %v191_v13 = vrot.slane %v190_v10, 4  ;;  %v125_v14 = vrot.slane %v124_v8, 1 }
 0x228   :  { %v175_v15 = vrot.slane %v174_v9, 2  ;;  %v141_v16 = vrot.slane %v140_v11, 1 }
 0x229   :  { %v192_v17 = vadd.f32 %v191_v13, %v190_v10  ;;  %v126_v18 = vadd.f32 %v125_v14, %v124_v8  ;;  %v158_v19 = vadd.f32 %v157_v12, %v156_v7 }
 0x22a   :  { %v176_v20 = vadd.f32 %v175_v15, %v174_v9  ;;  %v142_v21 = vadd.f32 %v141_v16, %v140_v11 }
 0x22b   :  { %v193_v22 = vrot.slane %v192_v17, 2  ;;  %272 = vpush %v126_v18  ;;  %v159_v23 = vrot.slane %v158_v19, 1 }
 0x22c   :  { %274 = vpush %v142_v21  ;;  %v177_v24 = vrot.slane %v176_v20, 1 }
 0x22d   :  { %v194_v25 = vadd.f32 %v193_v22, %v192_v17  ;;  %v160_v26 = vadd.f32 %v159_v23, %v158_v19 }
 0x22e   :  { %v178_v27 = vadd.f32 %v177_v24, %v176_v20 }
 0x22f   :  { %276 = vpush %v160_v26  ;;  %v195_v28 = vrot.slane %v194_v25, 1 }
 0x230   :  { %278 = vpush %v178_v27 }
 0x231   :  { %v196_v29 = vadd.f32 %v195_v28, %v194_v25 }
 0x233   :  { %280 = vpush %v196_v29 }
 0x25c   :  { %s415_s9 = spop %272 }
 0x25d   :  { %s214_s10 = smul.f32 %s415_s9, %s415_s9  ;;  %s419_s11 = spop %274 }
 0x25e   :  { %s209_s12 = smul.f32 %s419_s11, %s415_s9 }
 0x25f   :  { %s217_s13 = smul.f32 0.0625, %s214_s10 }
 0x260   :  { %s277_s14 = spop %276  ;;  %s220_s15 = smul.f32 %s419_s11, %s419_s11 }
 0x261   :  { %s218_s16 = ssub.f32 %s277_s14, %s217_s13  ;;  %s279_s17 = spop %278 }
 0x262   :  { %s223_s18 = smul.f32 0.0625, %s220_s15 }
 0x263   :  { %s219_s20 = smax.f32 %s360_s19, %s218_s16  ;;  %s212_s27 = smul.f32 0.0625, %s209_s12 }
 0x264   :  { %s224_s21 = ssub.f32 %s279_s17, %s223_s18  ;;  %s281_s24 = spop %280 }
 0x265   :  { %s213_s28 = ssub.f32 %s281_s24, %s212_s27 }
 0x266   :  { %s225_s22 = smax.f32 %s360_s19, %s224_s21 }
 0x267   :  { %s226_s23 = smul.f32 %s225_s22, %s219_s20 }
 0x269   :  { %v227_v30 = vstv %s226_s23 }
 0x26a   :  { %292 = vrsqrt.f32 %v227_v30  ;;  %vm230_vm2 = vcmp.eq.f32.partialorder %v227_v30, inf  ;;  %v233_v33 = vand.u32 2147483648, %v227_v30  ;;  %vm232_vm3 = vcmp.eq.f32.partialorder %v227_v30, 0.0 }
 0x274   :  { %v293_v31 = vpop.eup %292 }
 0x275   :  { %v229_v32 = vmul.f32 %v293_v31, %v227_v30 }
 0x277   :  { %v231_v34 = vsel %vm230_vm2, %v227_v30, %v229_v32 }
 0x278   :  { %v234_v35 = vsel %vm232_vm3, %v233_v33, %v231_v34 }
 0x279   :  { %282 = vpush %v234_v35 }
 0x2aa   :  { %s283_s25 = spop %282 }
 0x2ab   :  { %s236_s26 = sadd.f32 0.001, %s283_s25 }
 0x2ad   :  { %v237_v36 = vstv %s236_s26 }
 0x2ae   :  { %294 = vrcp.f32 %v237_v36 }
 0x2b8   :  { %v295_v37 = vpop.eup %294 }
 0x2b9   :  { %284 = vpush %v295_v37 }
 0x2ea   :  { %s285_s29 = spop %284 }
 0x2eb   :  { %s240_s30 = smul.f32 %s285_s29, %s213_s28 }
 0x2ed   :  { %242 = sst [smem:[#allocation8]] %s240_s30 }
 0x2ee   :  { %349 = shalt.err (!%p346_p4)
}
 0x2ef   :  { %s361_s8 = smov [#allocation8]  }
 0x2f0   :  { %250 = dma.smem_to_hbm %s361_s8, 16, %s439_s2, [#allocation5]  }
 0x2f1   :  { %354 = dma.done.wait [#allocation5], 16  }
 0x2f2   :  { %355 = vsyncadd [#allocation5], 4294967280 }
 0x2f3   :  { %254 = sfence }
 0x2f4   :  { %255 = vsyncpa [#allocation4], 1 }
 0x2f5   :  { %256 = vsyncpa [#allocation7], 1 }
 0x2f6   :  { %257 = vsyncpa [#allocation5], 1 }

</bundles_post_ra>
